<compile_context>
chip_gen: v6e
topology: v6e:2x2x1
jax: 0.10.0
libtpu: 0.0.40
codegen_flags: <defaults>
</compile_context>

<pallas_src>
import functools

import jax
import jax.numpy as jnp
from jax.experimental import pallas as pl
from jax.experimental.pallas import tpu as pltpu


def _freqmask_kernel(f_ref, fz_ref, fill_ref, x_ref, o_ref, *, num_masks):
    # f_ref, fz_ref : SMEM int32[num_masks]   (mask widths / starts)
    # fill_ref      : SMEM float32[num_masks] (precomputed fill value per mask)
    # x_ref, o_ref  : VMEM [F, T_TILE]
    cur = x_ref[...]                                  # single load, stays in vregs
    # Lane-constant row index: (F, 1), broadcast across the lane (time) axis.
    row = jax.lax.broadcasted_iota(jnp.int32, (cur.shape[0], 1), 0)
    # num_masks is a static Python int -> static unroll; applying masks
    # sequentially with the precomputed fills reproduces the in-place semantics.
    for i in range(num_masks):
        f = f_ref[i]
        fz = fz_ref[i]
        fill = fill_ref[i].astype(cur.dtype)
        mask = (row >= fz) & (row < fz + f)           # (F, 1)
        cur = jnp.where(mask, fill, cur)
    o_ref[...] = cur                                  # single store


def _compute_fills(x, f_arr, fz_arr, num_masks):
    """Per-mask fill values = mean of the tensor *after* all previous masks.

    Uses one full reduction (row sums + total) and an O(F) incremental update per
    mask instead of num_masks full-tensor means.
    """
    F, T = x.shape
    inv_n = 1.0 / float(F * T)
    xf = x.astype(jnp.float32)
    row_sums = jnp.sum(xf, axis=1)          # (F,)
    total = jnp.sum(row_sums)               # scalar
    rows = jnp.arange(F)
    fills = []
    for i in range(num_masks):
        fz = fz_arr[i]
        f_i = f_arr[i]
        fill = total * inv_n
        fills.append(fill)
        mask = (rows >= fz) & (rows < fz + f_i)
        masked_sum = jnp.sum(jnp.where(mask, row_sums, 0.0))
        new_row_sum = fill * float(T)
        total = total - masked_sum + new_row_sum * f_i.astype(jnp.float32)
        row_sums = jnp.where(mask, new_row_sum, row_sums)
    return jnp.stack(fills)


def _pick_t_tile(T):
    for cand in (512, 256, 128):
        if T % cand == 0:
            return cand
    return T  # non-128-multiple time axis: fall back to a single block


def freq_mask(x, f_arr, fz_arr, *, num_masks, replace_with_zero=False):
    """Apply frequency masking. x: [F, T] float. f_arr/fz_arr: int32[num_masks]."""
    F, T = x.shape
    if replace_with_zero:
        fill_arr = jnp.zeros((num_masks,), jnp.float32)
    else:
        fill_arr = _compute_fills(x, f_arr, fz_arr, num_masks)

    t_tile = _pick_t_tile(T)
    grid = (T // t_tile,)
    kernel = functools.partial(_freqmask_kernel, num_masks=num_masks)

    return pl.pallas_call(
        kernel,
        out_shape=jax.ShapeDtypeStruct(x.shape, x.dtype),
        grid=grid,
        in_specs=[
            pl.BlockSpec(memory_space=pltpu.MemorySpace.SMEM),   # f (widths)
            pl.BlockSpec(memory_space=pltpu.MemorySpace.SMEM),   # f_zero (starts)
            pl.BlockSpec(memory_space=pltpu.MemorySpace.SMEM),   # fill values
            pl.BlockSpec((F, t_tile), lambda j: (0, j)),         # x tile
        ],
        out_specs=pl.BlockSpec((F, t_tile), lambda j: (0, j)),
        compiler_params=pltpu.CompilerParams(
            dimension_semantics=("parallel",),
        ),
    )(f_arr, fz_arr, fill_arr, x)


def _reference(x, fs, fzs, replace_with_zero):
    # Pure-JAX reference mirroring the PyTorch forward (in-place semantics:
    # the mean is recomputed over the already-masked tensor for each mask).
    x = jnp.asarray(x)
    row = jnp.arange(x.shape[0])[:, None]
    for f, fz in zip(fs, fzs):
        fill = jnp.zeros((), x.dtype) if replace_with_zero else jnp.mean(x)
        mask = (row >= fz) & (row < fz + f)
        x = jnp.where(mask, fill, x)
    return x


if __name__ == "__main__":
    # Module config (defaults from the PyTorch module).
    max_masked_freqs = 5
    num_masks = 1
    replace_with_zero = False

    # Small 2-D spectrogram: [num_freqs, time]; time chosen 128-aligned so the
    # kernel runs with a multi-block grid ((F, 512) tiles, grid=(2,)).
    F, T = 16, 1024
    key = jax.random.PRNGKey(0)
    key, kx = jax.random.split(key)
    x = jax.random.normal(kx, (F, T), dtype=jnp.float32)

    # Deterministic draws replicating random.randrange(1, max+1) and
    # random.randrange(0, num_freqs - f).
    def draw_masks(key, n):
        fs, fzs = [], []
        for _ in range(n):
            key, k1, k2 = jax.random.split(key, 3)
            f = int(jax.random.randint(k1, (), 1, max_masked_freqs + 1))
            fz = int(jax.random.randint(k2, (), 0, F - f))
            fs.append(f)
            fzs.append(fz)
        return key, fs, fzs

    key, fs, fzs = draw_masks(key, num_masks)
    f_arr = jnp.array(fs, dtype=jnp.int32)
    fz_arr = jnp.array(fzs, dtype=jnp.int32)

    out = freq_mask(
        x, f_arr, fz_arr, num_masks=num_masks, replace_with_zero=replace_with_zero
    )
    out = jax.block_until_ready(out)
    ref = _reference(x, fs, fzs, replace_with_zero)
    assert jnp.allclose(out, ref, atol=1e-5), "mismatch vs reference (num_masks=1)"

    # Extra check: multiple masks with mean fill exercises the incremental-sum
    # recurrence (each later mask uses the mean of the already-masked tensor).
    key, fs3, fzs3 = draw_masks(key, 3)
    f3 = jnp.array(fs3, dtype=jnp.int32)
    fz3 = jnp.array(fzs3, dtype=jnp.int32)
    out3 = jax.block_until_ready(freq_mask(x, f3, fz3, num_masks=3))
    ref3 = _reference(x, fs3, fzs3, False)
    assert jnp.allclose(out3, ref3, atol=1e-5), "mismatch vs reference (num_masks=3)"

    # replace_with_zero path.
    outz = jax.block_until_ready(
        freq_mask(x, f_arr, fz_arr, num_masks=num_masks, replace_with_zero=True)
    )
    refz = _reference(x, fs, fzs, True)
    assert jnp.allclose(outz, refz), "mismatch vs reference (zero fill)"

    print("KERNEL_OK")
</pallas_src>

<mosaic_0001>
module attributes {stable_mosaic.version = 11 : i64} {
  func.func @_freqmask_kernel(%arg0: i32, %arg1: memref<1xi32, #tpu.memory_space<smem>>, %arg2: memref<1xi32, #tpu.memory_space<smem>>, %arg3: memref<1xf32, #tpu.memory_space<smem>>, %arg4: memref<16x512xf32, #tpu.memory_space<vmem>>, %arg5: memref<16x512xf32, #tpu.memory_space<vmem>>) attributes {dimension_semantics = [#tpu.dimension_semantics<parallel>], iteration_bounds = array<i64: 2>, scalar_prefetch = 0 : i64, scratch_operands = 0 : i64, tpu.core_type = #tpu.core_type<tc>, window_params = [{transform_indices = @transform_0, window_bounds = array<i64: 1>}, {transform_indices = @transform_1, window_bounds = array<i64: 1>}, {transform_indices = @transform_2, window_bounds = array<i64: 1>}, {transform_indices = @transform_3, window_bounds = array<i64: 16, 512>}, {transform_indices = @transform_4, window_bounds = array<i64: 16, 512>}]} {
    %c0 = arith.constant 0 : index
    %c0_0 = arith.constant 0 : index
    %0 = vector.load %arg4[%c0, %c0_0] : memref<16x512xf32, #tpu.memory_space<vmem>>, vector<16x512xf32>
    %1 = tpu.iota {dimensions = array<i32: 0>} : vector<16x1xi32>
    %c0_1 = arith.constant 0 : index
    %2 = memref.load %arg1[%c0_1] : memref<1xi32, #tpu.memory_space<smem>>
    %c0_2 = arith.constant 0 : index
    %3 = memref.load %arg2[%c0_2] : memref<1xi32, #tpu.memory_space<smem>>
    %c0_3 = arith.constant 0 : index
    %4 = memref.load %arg3[%c0_3] : memref<1xf32, #tpu.memory_space<smem>>
    %5 = vector.broadcast %3 : i32 to vector<16x1xi32>
    %6 = arith.cmpi sge, %1, %5 : vector<16x1xi32>
    %7 = arith.addi %3, %2 : i32
    %8 = vector.broadcast %7 : i32 to vector<16x1xi32>
    %9 = arith.cmpi slt, %1, %8 : vector<16x1xi32>
    %10 = arith.andi %6, %9 : vector<16x1xi1>
    %11 = vector.shape_cast %10 : vector<16x1xi1> to vector<16x1xi1>
    %12 = vector.broadcast %11 : vector<16x1xi1> to vector<16x512xi1>
    %13 = vector.broadcast %4 : f32 to vector<16x512xf32>
    %14 = arith.select %12, %13, %0 : vector<16x512xi1>, vector<16x512xf32>
    %c0_4 = arith.constant 0 : index
    %c0_5 = arith.constant 0 : index
    %15 = vector.load %arg5[%c0_4, %c0_5] : memref<16x512xf32, #tpu.memory_space<vmem>>, vector<16x512xf32>
    tpu.vector_store %arg5[%c0_4, %c0_5], %14 {strides = array<i32>} : memref<16x512xf32, #tpu.memory_space<vmem>>, vector<16x512xf32>,
    return
  }
  func.func @transform_0(%arg0: i32) -> i32 {
    %c0_i32 = arith.constant 0 : i32
    %c0_i32_0 = arith.constant 0 : i32
    return %c0_i32 : i32
  }
  func.func @transform_1(%arg0: i32) -> i32 {
    %c0_i32 = arith.constant 0 : i32
    %c0_i32_0 = arith.constant 0 : i32
    return %c0_i32 : i32
  }
  func.func @transform_2(%arg0: i32) -> i32 {
    %c0_i32 = arith.constant 0 : i32
    %c0_i32_0 = arith.constant 0 : i32
    return %c0_i32 : i32
  }
  func.func @transform_3(%arg0: i32) -> (i32, i32) {
    %c0_i32 = arith.constant 0 : i32
    %c0_i32_0 = arith.constant 0 : i32
    return %c0_i32, %arg0 : i32, i32
  }
  func.func @transform_4(%arg0: i32) -> (i32, i32) {
    %c0_i32 = arith.constant 0 : i32
    %c0_i32_0 = arith.constant 0 : i32
    return %c0_i32, %arg0 : i32, i32
  }
}

</mosaic_0001>

<bundles_post_ra>
// kernel: tpu_custom_call.1
= control target key start
LH: loop header
LB: loop body
LE: loop exit
PB: predicated region body
PF: predicated region fallthrough
CT: control target
= control target key end

     0   :  { %s723_s0 = inlined_call_operand.<no memory space> [shape: s32[1], index: 0, kind: input, shape index: {}]   ;;  %s724_s1 = inlined_call_operand.<no memory space> [shape: s32[1], index: 1, kind: input, shape index: {}]   ;;  %s725_s2 = inlined_call_operand.<no memory space> [shape: f32[1], index: 2, kind: input, shape index: {}]   ;;  %s726_s3 = inlined_call_operand.hbm [shape: f32[16,1024], index: 3, kind: input, shape index: {}]   ;;  %s727_s4 = inlined_call_operand.hbm [shape: f32[16,1024], index: 4, kind: output, shape index: {}]  }
   0x1   :  { %9 = sst [smem:[#allocation2]] %s723_s0 }
   0x2   :  { %10 = sst [smem:[#allocation3]] %s724_s1 }
   0x3   :  { %11 = sst [smem:[#allocation4]] %s725_s2 }
   0x4   :  { %12 = vsyncpa [#allocation6], 0 }
   0x5   :  { %14 = vsyncpa [#allocation6 + $0x1], 0 }
   0x6   :  { %15 = vsyncpa [#allocation7], 0 }
   0x7   :  { %17 = vsyncpa [#allocation7 + $0x1], 0  ;;  %s556_s21 = smov 0   ;;  %s558_s22 = smov 0  }
   0x8   :  { %s560_s23 = smov 0   ;;  %s562_s24 = smov 0  }
   0x9 LB: > { %s577_s0 = sadd.s32 4294967295, %s512_s24   ;;  %s352_s1 = sadd.s32 4294967294, %s512_s24   ;;  %s512_s24 = sphi %s562_s24, %s743_s24   ;;  %s508_s23 = sphi %s560_s23, %s742_s23   ;;  %s504_s22 = sphi %s558_s22, %s741_s22   ;;  %s500_s21 = sphi %s556_s21, %s740_s21  }
   0xa   : > { %s581_s2 = sadd.s32 1, %s512_s24   ;;  %s93_s25 = sadd.s32 1, %s508_s23 }
   0xb   : > { %s90_s26 = ssub.s32 %s512_s24, %s581_s2  ;;  %p100_p0 = scmp.ne.s32.totalorder %s508_s23, %s504_s22 }
   0xc   : > { %p91_p1 = scmp.eq.s32.totalorder %s90_s26, 0  ;;  %p101_p2 = scmp.eq.s32.totalorder %s512_s24, 0 }
   0xd   : > { %p106_p3 = scmp.ne.s32.totalorder %s504_s22, %s500_s21  ;;  %p107_p4 = scmp.eq.s32.totalorder %s577_s0, 0 }
   0xe   : > { %s593_s27 = scalar_select %p91_p1, %s508_s23, %s93_s25  }
   0xf   : > { %p595_p5 = por %p101_p2, %p100_p0  ;;  %p599_p6 = por %p107_p4, %p106_p3 }
  0x10   : > { %p130_p7 = scmp.eq.s32.totalorder %s577_s0, 1  ;;  %p136_p8 = scmp.eq.s32.totalorder %s352_s1, 1 }
  0x11   : > { %s731_s29 = scalar_select %p599_p6, 1, 0 }
  0x12   : > { %p380_p10 = scmp.lt.s32.totalorder %s512_s24, 2  ;;  %p606_p11 = por %p130_p7, %p100_p0 }
  0x13   : > { %p610_p12 = por %p136_p8, %p106_p3  ;;  %s165_s6 = sand.u32 1, %s508_s23  }
  0x14   : > { %s732_s30 = scalar_select %p606_p11, 1, 0 }
  0x15   : > { %s733_s5 = scalar_select %p610_p12, 1, 0 }
  0x16   : > { %s366_s7 = sshll.u32 %s512_s24, 9  ;;  %s355_s8 = sshll.u32 %s165_s6, 6 }
  0x17   : > { %s619_s11 = scalar_lea.hbm %s726_s3, %s366_s7  ;;  %s169_s12 = scalar_lea.vmem [#allocation5], %s355_s8 }
  0x18   : > { %s176_s13 = sshll.u32 %s169_s12, 4  ;;  %p623_p13 = pnand %p380_p10, %p595_p5  ;;  %s627_s13 = int_to_ptr.vmem [resolvable:$true] %s176_s13 }
  0x19   : > { %s630_s15 = scalar_lea.sflag [#allocation6], %s165_s6  ;;  %s420_s16 = scalar_lea.hbm %s619_s11, 1024 }
  0x1a   : > { %p421_p1 = scmp.ne.s32.totalorder %s619_s11, %s420_s16  ;;  %p422_p2 = pneg %p623_p13 }
  0x1b   : > { %s425_s19 = scalar_lea.hbm %s726_s3, 2048  ;;  %p426_p5 = scmp.lt.s32.totalorder %s619_s11, %s726_s3 }
  0x1c   : > { %p423_p3 = pnand %p422_p2, %p421_p1  ;;  %p427_p7 = scmp.lt.s32.totalorder %s425_s19, %s420_s16 }
  0x1e   : > { %p424_p4 = pneg %p423_p3  ;;  %p428_p8 = por %p427_p7, %p426_p5 }
  0x20   : > { %p429_p10 = pnand %p428_p8, %p424_p4 }
  0x22   : > { %432 = shalt.err (!%p429_p10)
}
  0x23   : > { %s433_s25 = scalar_lea.vmem %s627_s13, 1024  ;;  %s514_s26 = smov [#allocation5]  }
  0x24   : > { %p434_p9 = scmp.ne.s32.totalorder %s627_s13, %s433_s25  ;;  %s438_s28 = sshll.u32 %s514_s26, 4  ;;  %s439_s28 = int_to_ptr.vmem [resolvable:$false] %s438_s28 }
  0x25   : > { %s440_s6 = scalar_lea.vmem %s439_s28, 2048  ;;  %p441_p3 = scmp.lt.s32.totalorder %s627_s13, %s439_s28 }
  0x26   : > { %p436_p0 = pnand %p434_p9, %p422_p2  ;;  %p442_p12 = scmp.lt.s32.totalorder %s440_s6, %s433_s25 }
  0x28   : > { %p437_p1 = pneg %p436_p0  ;;  %p443_p11 = por %p442_p12, %p441_p3 }
  0x2a   : > { %p444_p6 = pnand %p443_p11, %p437_p1 }
  0x2c   : > { %447 = shalt.err (!%p444_p6)
}
  0x2d   : > { %s515_s7 = smov 1024   ;;  %s516_s8 = smov 512  }
  0x2e   : > { %s517_s9 = smov 32   ;;  %p184_p9 = scmp.lt.s32.totalorder %s512_s24, 3 }
  0x2f   : > { %375 = dma.hbm_to_vmem [thread:$0]  (!%p623_p13), %s619_s11, 1024, %s627_s13, %s630_s15, %s515_s7, %s516_s8, %s517_s9  }
  0x30   : > { %p735_p0 = scmp.ge.s32.totalorder %s512_s24, 1 }
  0x32   : > { %p185_p2 = pnand %p735_p0, %p184_p9 }
  0x33   : > { %s655_s10 = sand.u32 (!%p185_p2), 1, %s504_s22   ;;  %p736_p6 = scmp.ne.s32.totalorder (!%p185_p2), %s731_s29, 0 }
  0x34   : > { %188 = sbr.rel (%p185_p2) target bundleno = 88 (0x58), region = 36  ;;  %s359_s12 = sshll.u32 (!%p185_p2), %s655_s10, 6 }
  0x35   : > { %s191_s16 = scalar_lea.sflag (!%p185_p2), [#allocation6], %s655_s10  ;;  %s194_s17 = scalar_lea.vmem (!%p185_p2), [#allocation5], %s359_s12 }
  0x39   : > { %491 = dma.done.wait (%p736_p6), %s191_s16, 1024  }
  0x3a   : > { %493 = vsyncadd (%p736_p6), %s191_s16, 4294966272  ;;  %v229_v0 = vlaneseq  ;;  %s232_s11 = sld [smem:[#allocation2]]  ;;  %s663_s15 = scalar_lea.vmem [#allocation8], %s359_s12  ;;  %v221_v3 = vld [vmem:[%s194_s17] sm:$0xff]  ;;  %v222_v5 = vld [vmem:[%s194_s17 + $0x8] sm:$0xff] }
  0x3b   : > { %s233_s13 = sld [smem:[#allocation3]]  ;;  %s279_s18 = sshll.u32 %s663_s15, 4  ;;  %v223_v6 = vld [vmem:[%s194_s17 + $0x10] sm:$0xff]  ;;  %v224_v9 = vld [vmem:[%s194_s17 + $0x18] sm:$0xff]  ;;  %v225_v10 = vld [vmem:[%s194_s17 + $0x20] sm:$0xff]  ;;  %s667_s18 = int_to_ptr.vmem [resolvable:$true] %s279_s18 }
  0x3c   : > { %v230_v1 = vshrl.u32 %v229_v0, 7  ;;  %s234_s14 = sld [smem:[#allocation4]]  ;;  %s367_s20 = sshll.u32 %s577_s0, 9  ;;  %v226_v11 = vld [vmem:[%s194_s17 + $0x28] sm:$0xff]  ;;  %v227_v12 = vld [vmem:[%s194_s17 + $0x30] sm:$0xff]  ;;  %v228_v13 = vld [vmem:[%s194_s17 + $0x38] sm:$0xff] }
  0x3d   : > { %s672_s1 = scalar_lea.hbm %s727_s4, %s367_s20  ;;  %s266_s25 = scalar_lea.sflag [#allocation7], %s655_s10 }
  0x3e   : > { %v231_v2 = vadd.s32 8, %v230_v1  ;;  %s448_s26 = scalar_lea.vmem %s667_s18, 1024  ;;  %p737_p12 = scmp.ne.s32.totalorder %s732_s30, 0 }
  0x3f   : > { %p449_p11 = scmp.ne.s32.totalorder %s667_s18, %s448_s26  ;;  %s518_s28 = smov [#allocation8]  }
  0x40   : > { %s452_s6 = sshll.u32 %s518_s28, 4  ;;  %s453_s6 = int_to_ptr.vmem [resolvable:$false] %s452_s6 }
  0x41   : > { %v235_v4 = vstv %s233_s13  ;;  %s238_s19 = sadd.s32 %s233_s13, %s232_s11  ;;  %p450_p13 = pnand %p449_p11, %p737_p12 }
  0x42   : > { %vm236_vm0 = vcmp.ge.s32.totalorder %v230_v1, %v235_v4  ;;  %v239_v7 = vstv %s238_s19  ;;  %v248_v8 = vstv %s234_s14  ;;  %vm237_vm1 = vcmp.ge.s32.totalorder %v231_v2, %v235_v4  ;;  %s454_s7 = scalar_lea.vmem %s453_s6, 2048  ;;  %p455_p5 = scmp.lt.s32.totalorder %s667_s18, %s453_s6 }
  0x43   : > { %vm240_vm2 = vcmp.lt.s32.totalorder %v230_v1, %v239_v7  ;;  %vm241_vm3 = vcmp.lt.s32.totalorder %v231_v2, %v239_v7  ;;  %p451_p4 = pneg %p450_p13  ;;  %p456_p7 = scmp.lt.s32.totalorder %s454_s7, %s448_s26 }
  0x44   : > { %vm242_vm4 = vmand %vm236_vm0, %vm240_vm2 }
  0x45   : > { %v249_v14 = vsel %vm242_vm4, %v248_v8, %v221_v3  ;;  %v250_v15 = vsel %vm242_vm4, %v248_v8, %v222_v5  ;;  %v251_v16 = vsel %vm242_vm4, %v248_v8, %v223_v6  ;;  %v252_v17 = vsel %vm242_vm4, %v248_v8, %v224_v9  ;;  %vm243_vm5 = vmand %vm237_vm1, %vm241_vm3  ;;  %p457_p8 = por %p456_p7, %p455_p5 }
  0x46   : > { %257 = vst [vmem:[%s663_s15] sm:$0xff] %v249_v14  ;;  %258 = vst [vmem:[%s663_s15 + $0x8] sm:$0xff] %v250_v15  ;;  %v253_v18 = vsel %vm243_vm5, %v248_v8, %v225_v10  ;;  %v254_v19 = vsel %vm243_vm5, %v248_v8, %v226_v11  ;;  %v255_v20 = vsel %vm243_vm5, %v248_v8, %v227_v12 }
  0x47   : > { %259 = vst [vmem:[%s663_s15 + $0x10] sm:$0xff] %v251_v16  ;;  %260 = vst [vmem:[%s663_s15 + $0x18] sm:$0xff] %v252_v17  ;;  %v256_v21 = vsel %vm243_vm5, %v248_v8, %v228_v13  ;;  %p458_p10 = pnand %p457_p8, %p451_p4 }
  0x48   : > { %261 = vst [vmem:[%s663_s15 + $0x20] sm:$0xff] %v253_v18  ;;  %262 = vst [vmem:[%s663_s15 + $0x28] sm:$0xff] %v254_v19 }
  0x49   : > { %263 = vst [vmem:[%s663_s15 + $0x30] sm:$0xff] %v255_v20  ;;  %264 = vst [vmem:[%s663_s15 + $0x38] sm:$0xff] %v256_v21 }
  0x4a   : > { %461 = shalt.err (!%p458_p10)
}
  0x4b   : > { %s462_s8 = scalar_lea.hbm %s672_s1, 1024  ;;  %s466_s16 = scalar_lea.hbm %s727_s4, 2048 }
  0x4c   : > { %p463_p1 = scmp.ne.s32.totalorder %s672_s1, %s462_s8  ;;  %p467_p0 = scmp.lt.s32.totalorder %s672_s1, %s727_s4 }
  0x4d   : > { %p468_p2 = scmp.lt.s32.totalorder %s466_s16, %s462_s8 }
  0x4e   : > { %p464_p3 = pnand %p463_p1, %p737_p12 }
  0x4f   : > { %p469_p6 = por %p468_p2, %p467_p0 }
  0x50   : > { %p465_p9 = pneg %p464_p3 }
  0x52   : > { %p470_p11 = pnand %p469_p6, %p465_p9 }
  0x54   : > { %473 = shalt.err (!%p470_p11)
}
  0x55   : > { %s519_s13 = smov 512   ;;  %s520_s14 = smov 1024  }
  0x56   : > { %s521_s15 = smov 32  }
  0x57   : > { %370 = dma.vmem_to_hbm [thread:$0]  (%p737_p12), %s667_s18, 1024, %s672_s1, %s266_s25, %s519_s13, %s520_s14, %s521_s15  }
  0x58 PF: > { %s294_s19 = sand.u32 1, %s500_s21   ;;  %p738_p13 = scmp.ne.s32.totalorder %s733_s5, 0 }
  0x59   : > { %p739_p4 = scmp.ge.s32.totalorder %s512_s24, 2  ;;  %s295_s20 = scalar_lea.sflag [#allocation7], %s294_s19 }
  0x5b   : > { %p377_p5 = pnand %p739_p4, %p738_p13 }
  0x5d   : > { %p378_p7 = pneg %p377_p5 }
  0x5f   : > { %495 = dma.done.wait (%p378_p7), %s295_s20, 1024  }
  0x60   : > { %497 = vsyncadd (%p378_p7), %s295_s20, 4294966272  ;;  %p20_p8 = scmp.ge.s32.totalorder %s581_s2, 4   ;;  %s740_s21 = smov %s504_s22 }
  0x61   : > { %s741_s22 = smov %s508_s23  ;;  %s742_s23 = smov %s593_s27 }
  0x62   : > { %s743_s24 = smov %s581_s2  ;;  %22 = sbr.rel (!%p20_p8) target bundleno = 9 (0x9), region = 81 }
  0x67   :  { %300 = vsyncpa [#allocation6], 1 }
  0x68   :  { %302 = vsyncpa [#allocation6 + $0x1], 1 }
  0x69   :  { %303 = vsyncpa [#allocation7], 1 }
  0x6a   :  { %305 = vsyncpa [#allocation7 + $0x1], 1 }

</bundles_post_ra>
